<compile_context>
chip_gen: v7x
topology: tpu7x:2x2x1
jax: 0.10.0
libtpu: 0.0.40
codegen_flags: <defaults>
</compile_context>

<pallas_src>
import numpy as np
import jax
import jax.numpy as jnp
from jax.experimental import pallas as pl
from jax.experimental.pallas import tpu as pltpu

LANES = 128


def make_fcnn_kernel(n_layers):
    """Fused MLP over a (features, batch_tile) activation slab held in vregs."""
    n_hidden = n_layers - 1  # Linear+Tanh layers; the final layer is 1-wide

    def kernel(*refs):
        # refs = (x_ref, w0, b0, ..., w_{n_hidden-1}, b_{n_hidden-1},
        #         w_last_col, b_last, out_ref)
        x_ref = refs[0]                                   # (tm, D0) bf16, batch-major
        out_ref = refs[-1]                                # (1, tm)  f32
        prefs = refs[1:-1]

        h = None
        for i in range(n_hidden):
            w = prefs[2 * i][...]                         # (out_i, in_i)  bf16
            b = prefs[2 * i + 1][...]                     # (out_i, 1)     f32
            if i == 0:
                # Contract on the feature axis of BOTH operands: W @ X^T with no
                # materialized transpose (the MXU consumes trans_b directly).
                acc = jax.lax.dot_general(
                    w, x_ref[...],
                    dimension_numbers=(((1,), (1,)), ((), ())),
                    preferred_element_type=jnp.float32)   # (out_0, tm) f32
            else:
                acc = jnp.dot(w, h, preferred_element_type=jnp.float32)
            acc = jnp.tanh(acc + b)                       # f32 bias-add + tanh
            # TODO(synk): training-mode dropout omitted (eval-mode dropout is identity).
            # Carry the activation in bf16 between MXU layers (halves vreg/DMA
            # pressure); the slab feeding the f32 head stays f32 for precision.
            h = acc.astype(jnp.bfloat16) if (i + 1) < n_hidden else acc

        # Final Linear has out_features == 1: skip the MXU (a 1-wide systolic
        # pass wastes 127/128 of the array) and use VPU multiply + sublane sum.
        w_last = prefs[-2][...]                           # (in_last, 1) f32
        b_last = prefs[-1][...]                           # (1, 1)       f32
        y = jnp.sum(h * w_last, axis=0, keepdims=True) + b_last
        out_ref[...] = y.astype(out_ref.dtype)            # (1, tm) lane-dense store

    return kernel


def _padded_vmem_bytes(shape, dtype):
    """(sublane, lane)-tile-padded VMEM footprint of one buffer (dtype-aware)."""
    dtype = jnp.dtype(dtype)
    shape = tuple(int(s) for s in shape)
    if len(shape) == 1:
        shape = (1,) + shape
    lead = int(np.prod(shape[:-2])) if len(shape) > 2 else 1
    packing = max(1, 4 // dtype.itemsize)       # f32 -> 1, bf16 -> 2, int8 -> 4
    sub_tile = 8 * packing                      # bf16 pads sublanes to 16, int8 to 32
    sub = -(-shape[-2] // sub_tile) * sub_tile
    lane = -(-shape[-1] // LANES) * LANES
    return lead * sub * lane * dtype.itemsize


def _vmem_capacity_bytes():
    try:
        return int(pltpu.get_tpu_info().vmem_capacity_bytes)
    except Exception:
        return 64 * 2 ** 20                     # conservative (v7x per-TC size)


def fcnn_forward(x, weights, biases):
    """Forward pass.

    x:        (B, C, L) float32
    weights:  torch nn.Linear layout, weights[i]: (out_i, in_i)
    biases:   biases[i]: (out_i,)
    returns:  (B,) float32   (== torch .flatten(), final out_features is 1)
    """
    n_layers = len(weights)
    assert n_layers >= 2, "FCNN has at least one hidden layer + the 1-wide head"
    assert weights[-1].shape[0] == 1, "FCNN unit schedule always ends at 1 output"

    B = x.shape[0]
    # bf16 input slab: halves the only per-tile DMA that scales with batch.
    x_flat = x.reshape(B, -1).astype(jnp.bfloat16)        # torch flatten(start_dim=1)
    D0 = x_flat.shape[1]

    # ---- parameters: hidden layers in bf16 (MXU), 1-wide head in f32 --------
    params = []
    for li in range(n_layers - 1):
        params.append(weights[li].astype(jnp.bfloat16))               # (out, in)
        params.append(biases[li].reshape(-1, 1).astype(jnp.float32))  # (out, 1)
    params.append(weights[-1].reshape(-1, 1).astype(jnp.float32))     # (in_last, 1)
    params.append(biases[-1].reshape(1, 1).astype(jnp.float32))       # (1, 1)

    weight_bytes_single = sum(_padded_vmem_bytes(p.shape, p.dtype) for p in params)
    vmem_cap = int(0.75 * _vmem_capacity_bytes())   # ~48 MiB on v7x, ~96 MiB on v5e/v6e
    # TODO(synk): if the single-buffered resident-weight footprint ever exceeds the
    # VMEM cap (very wide layers on v7x's 64 MiB), stream the largest Linear's weight
    # over an extra "arbitrary" grid axis instead of keeping all weights resident.

    # ---- batch tile: largest that fits VMEM; keep >=2 blocks when batch allows ----
    b128 = pl.cdiv(B, LANES)
    tm_cap = LANES * max(1, b128 // 2)              # >=2 grid blocks (v7x has 2 TCs)
    tm = LANES
    for cand in (512, 384, 256, 128):
        if cand > tm_cap:
            continue
        stream = (2 * _padded_vmem_bytes((cand, D0), jnp.bfloat16)
                  + 2 * _padded_vmem_bytes((1, cand), jnp.float32))
        if int(1.25 * (weight_bytes_single + stream)) <= vmem_cap:
            tm = cand
            break

    n_blocks = pl.cdiv(B, tm)
    B_pad = n_blocks * tm
    if B_pad != B:
        x_flat = jnp.pad(x_flat, ((0, B_pad - B), (0, 0)))

    # ---- advisory cost estimate for XLA's scheduler --------------------------
    flops = 0
    transcendentals = 0
    for li in range(n_layers):
        out_f, in_f = int(weights[li].shape[0]), int(weights[li].shape[1])
        flops += 2 * out_f * in_f * B_pad
        if li < n_layers - 1:
            transcendentals += out_f * B_pad
    bytes_accessed = (x_flat.size * x_flat.dtype.itemsize
                      + sum(int(np.prod(p.shape)) * p.dtype.itemsize for p in params)
                      + B_pad * 4)
    cost = pl.CostEstimate(flops=int(flops), transcendentals=int(transcendentals),
                           bytes_accessed=int(bytes_accessed))

    def run(single_buffer_weights):
        # Explicit VMEM budget from the real operand footprint.
        wb_factor = 1 if single_buffer_weights else 2
        footprint = (2 * _padded_vmem_bytes((tm, D0), jnp.bfloat16)      # input dbl-buf
                     + 2 * _padded_vmem_bytes((1, tm), jnp.float32)      # output dbl-buf
                     + wb_factor * weight_bytes_single)
        vmem_limit = int(min(vmem_cap, max(16 * 2 ** 20, int(1.5 * footprint))))

        in_specs = [pl.BlockSpec((tm, D0), lambda i: (i, 0))]
        for p in params:
            if single_buffer_weights:
                # Resident weights never change block index -> no double buffer.
                spec = pl.BlockSpec(p.shape, lambda i: (0, 0),
                                    pipeline_mode=pl.Buffered(1))
            else:
                spec = pl.BlockSpec(p.shape, lambda i: (0, 0))
            in_specs.append(spec)

        return pl.pallas_call(
            make_fcnn_kernel(n_layers),
            out_shape=jax.ShapeDtypeStruct((1, B_pad), jnp.float32),
            grid=(n_blocks,),
            in_specs=in_specs,
            out_specs=pl.BlockSpec((1, tm), lambda i: (0, i)),
            compiler_params=pltpu.CompilerParams(
                dimension_semantics=("parallel",),    # megacore batch split on v7x
                vmem_limit_bytes=vmem_limit),
            cost_estimate=cost,
        )(x_flat, *params)

    try:
        out = jax.block_until_ready(run(True))
    except Exception:
        # pipeline_mode/Buffered(1) unsupported in this jax version -> default buffering.
        out = jax.block_until_ready(run(False))

    return out.reshape(-1)[:B]                            # == torch .flatten()


def build_params(key, input_length, num_input_channels, num_hidden):
    """Deterministic synthetic parameters in torch nn.Linear layout."""
    units = np.round(
        np.linspace(1, input_length * num_input_channels, num_hidden + 2)[::-1]
    ).astype(int)
    weights, biases = [], []
    for i in range(len(units) - 1):
        fan_in, fan_out = int(units[i]), int(units[i + 1])
        key, kw, kb = jax.random.split(key, 3)
        bound = 1.0 / np.sqrt(fan_in)                     # torch default init range
        weights.append(jax.random.uniform(kw, (fan_out, fan_in), jnp.float32,
                                          -bound, bound))
        biases.append(jax.random.uniform(kb, (fan_out,), jnp.float32,
                                         -bound, bound))
    return weights, biases


if __name__ == "__main__":
    # Shapes consistent with FCNN.forward: batch=2, channels=4, length=16,
    # num_hidden=1  =>  units = [64, 32, 1].
    B, C, L, num_hidden = 2, 4, 16, 1

    key = jax.random.PRNGKey(0)
    key, kx = jax.random.split(key)
    x = jax.random.normal(kx, (B, C, L), jnp.float32)

    weights, biases = build_params(key, input_length=L, num_input_channels=C,
                                   num_hidden=num_hidden)

    out = fcnn_forward(x, weights, biases)
    jax.block_until_ready(out)

    # Plain-JAX f32 reference (eval-mode dropout == identity). The kernel runs
    # its hidden matmuls in bf16, so tolerances are loosened accordingly.
    ref = x.reshape(B, -1)
    for i in range(len(weights) - 1):
        ref = jnp.tanh(ref @ weights[i].T + biases[i])
    ref = (ref @ weights[-1].T + biases[-1]).reshape(-1)

    assert out.shape == (B,)
    np.testing.assert_allclose(np.asarray(out), np.asarray(ref),
                               rtol=2e-2, atol=2e-2)

    print("KERNEL_OK")
</pallas_src>

<mosaic_0001>
module attributes {stable_mosaic.version = 11 : i64} {
  func.func @kernel(%arg0: i32, %arg1: memref<128x64xbf16, #tpu.memory_space<vmem>>, %arg2: memref<32x64xbf16, #tpu.memory_space<vmem>>, %arg3: memref<32x1xf32, #tpu.memory_space<vmem>>, %arg4: memref<32x1xf32, #tpu.memory_space<vmem>>, %arg5: memref<1x1xf32, #tpu.memory_space<vmem>>, %arg6: memref<1x128xf32, #tpu.memory_space<vmem>>) attributes {dimension_semantics = [#tpu.dimension_semantics<parallel>], iteration_bounds = array<i64: 1>, scalar_prefetch = 0 : i64, scratch_operands = 0 : i64, tpu.core_type = #tpu.core_type<tc>, window_params = [{transform_indices = @transform_0, window_bounds = array<i64: 128, 64>}, {pipeline_mode = #tpu.pipeline_mode<synchronous>, transform_indices = @transform_1, window_bounds = array<i64: 32, 64>}, {pipeline_mode = #tpu.pipeline_mode<synchronous>, transform_indices = @transform_2, window_bounds = array<i64: 32, 1>}, {pipeline_mode = #tpu.pipeline_mode<synchronous>, transform_indices = @transform_3, window_bounds = array<i64: 32, 1>}, {pipeline_mode = #tpu.pipeline_mode<synchronous>, transform_indices = @transform_4, window_bounds = array<i64: 1, 1>}, {transform_indices = @transform_5, window_bounds = array<i64: 1, 128>}]} {
    %c0 = arith.constant 0 : index
    %c0_0 = arith.constant 0 : index
    %0 = vector.load %arg2[%c0, %c0_0] : memref<32x64xbf16, #tpu.memory_space<vmem>>, vector<32x64xbf16>
    %c0_1 = arith.constant 0 : index
    %c0_2 = arith.constant 0 : index
    %1 = vector.load %arg3[%c0_1, %c0_2] : memref<32x1xf32, #tpu.memory_space<vmem>>, vector<32x1xf32>
    %c0_3 = arith.constant 0 : index
    %c0_4 = arith.constant 0 : index
    %2 = vector.load %arg1[%c0_3, %c0_4] : memref<128x64xbf16, #tpu.memory_space<vmem>>, vector<128x64xbf16>
    %cst = arith.constant dense<0.000000e+00> : vector<32x128xf32>
    %3 = tpu.matmul %0, %2, %cst {dimension_numbers = #tpu.dot_dimension_numbers<[1], [1], [0], [0], [0, 0, 1, 0], [], []>} : vector<32x64xbf16>, vector<128x64xbf16>, vector<32x128xf32> -> vector<32x128xf32>
    %4 = vector.broadcast %1 : vector<32x1xf32> to vector<32x128xf32>
    %5 = arith.addf %3, %4 : vector<32x128xf32>
    %6 = math.tanh %5 : vector<32x128xf32>
    %c0_5 = arith.constant 0 : index
    %c0_6 = arith.constant 0 : index
    %7 = vector.load %arg4[%c0_5, %c0_6] : memref<32x1xf32, #tpu.memory_space<vmem>>, vector<32x1xf32>
    %c0_7 = arith.constant 0 : index
    %c0_8 = arith.constant 0 : index
    %8 = vector.load %arg5[%c0_7, %c0_8] : memref<1x1xf32, #tpu.memory_space<vmem>>, vector<1x1xf32>
    %9 = vector.broadcast %7 : vector<32x1xf32> to vector<32x128xf32>
    %10 = arith.mulf %6, %9 : vector<32x128xf32>
    %cst_9 = arith.constant dense<0.000000e+00> : vector<128xf32>
    %11 = vector.multi_reduction <add>, %10, %cst_9 [0] : vector<32x128xf32> to vector<128xf32>
    %12 = vector.shape_cast %11 : vector<128xf32> to vector<1x128xf32>
    %13 = vector.broadcast %8 : vector<1x1xf32> to vector<1x128xf32>
    %14 = arith.addf %12, %13 : vector<1x128xf32>
    %c0_10 = arith.constant 0 : index
    %c0_11 = arith.constant 0 : index
    %15 = vector.load %arg6[%c0_10, %c0_11] : memref<1x128xf32, #tpu.memory_space<vmem>>, vector<1x128xf32>
    tpu.vector_store %arg6[%c0_10, %c0_11], %14 {strides = array<i32>} : memref<1x128xf32, #tpu.memory_space<vmem>>, vector<1x128xf32>,
    return
  }
  func.func @transform_0(%arg0: i32) -> (i32, i32) {
    %c0_i32 = arith.constant 0 : i32
    %c0_i32_0 = arith.constant 0 : i32
    return %arg0, %c0_i32 : i32, i32
  }
  func.func @transform_1(%arg0: i32) -> (i32, i32) {
    %c0_i32 = arith.constant 0 : i32
    %c0_i32_0 = arith.constant 0 : i32
    %c0_i32_1 = arith.constant 0 : i32
    return %c0_i32, %c0_i32_0 : i32, i32
  }
  func.func @transform_2(%arg0: i32) -> (i32, i32) {
    %c0_i32 = arith.constant 0 : i32
    %c0_i32_0 = arith.constant 0 : i32
    %c0_i32_1 = arith.constant 0 : i32
    return %c0_i32, %c0_i32_0 : i32, i32
  }
  func.func @transform_3(%arg0: i32) -> (i32, i32) {
    %c0_i32 = arith.constant 0 : i32
    %c0_i32_0 = arith.constant 0 : i32
    %c0_i32_1 = arith.constant 0 : i32
    return %c0_i32, %c0_i32_0 : i32, i32
  }
  func.func @transform_4(%arg0: i32) -> (i32, i32) {
    %c0_i32 = arith.constant 0 : i32
    %c0_i32_0 = arith.constant 0 : i32
    %c0_i32_1 = arith.constant 0 : i32
    return %c0_i32, %c0_i32_0 : i32, i32
  }
  func.func @transform_5(%arg0: i32) -> (i32, i32) {
    %c0_i32 = arith.constant 0 : i32
    %c0_i32_0 = arith.constant 0 : i32
    return %c0_i32, %arg0 : i32, i32
  }
}

module attributes {stable_mosaic.version = 11 : i64} {
  func.func @kernel(%arg0: i32, %arg1: memref<128x64xbf16, #tpu.memory_space<vmem>>, %arg2: memref<32x64xbf16, #tpu.memory_space<vmem>>, %arg3: memref<32x1xf32, #tpu.memory_space<vmem>>, %arg4: memref<32x1xf32, #tpu.memory_space<vmem>>, %arg5: memref<1x1xf32, #tpu.memory_space<vmem>>, %arg6: memref<1x128xf32, #tpu.memory_space<vmem>>) attributes {dimension_semantics = [#tpu.dimension_semantics<parallel>], iteration_bounds = array<i64: 1>, scalar_prefetch = 0 : i64, scratch_operands = 0 : i64, tpu.core_type = #tpu.core_type<tc>, window_params = [{transform_indices = @transform_0, window_bounds = array<i64: 128, 64>}, {pipeline_mode = #tpu.pipeline_mode<synchronous>, transform_indices = @transform_1, window_bounds = array<i64: 32, 64>}, {pipeline_mode = #tpu.pipeline_mode<synchronous>, transform_indices = @transform_2, window_bounds = array<i64: 32, 1>}, {pipeline_mode = #tpu.pipeline_mode<synchronous>, transform_indices = @transform_3, window_bounds = array<i64: 32, 1>}, {pipeline_mode = #tpu.pipeline_mode<synchronous>, transform_indices = @transform_4, window_bounds = array<i64: 1, 1>}, {transform_indices = @transform_5, window_bounds = array<i64: 1, 128>}]} {
    %c0 = arith.constant 0 : index
    %c0_0 = arith.constant 0 : index
    %0 = vector.load %arg2[%c0, %c0_0] : memref<32x64xbf16, #tpu.memory_space<vmem>>, vector<32x64xbf16>
    %c0_1 = arith.constant 0 : index
    %c0_2 = arith.constant 0 : index
    %1 = vector.load %arg3[%c0_1, %c0_2] : memref<32x1xf32, #tpu.memory_space<vmem>>, vector<32x1xf32>
    %c0_3 = arith.constant 0 : index
    %c0_4 = arith.constant 0 : index
    %2 = vector.load %arg1[%c0_3, %c0_4] : memref<128x64xbf16, #tpu.memory_space<vmem>>, vector<128x64xbf16>
    %cst = arith.constant dense<0.000000e+00> : vector<32x128xf32>
    %3 = tpu.matmul %0, %2, %cst {dimension_numbers = #tpu.dot_dimension_numbers<[1], [1], [0], [0], [0, 0, 1, 0], [], []>} : vector<32x64xbf16>, vector<128x64xbf16>, vector<32x128xf32> -> vector<32x128xf32>
    %4 = vector.broadcast %1 : vector<32x1xf32> to vector<32x128xf32>
    %5 = arith.addf %3, %4 : vector<32x128xf32>
    %6 = math.tanh %5 : vector<32x128xf32>
    %c0_5 = arith.constant 0 : index
    %c0_6 = arith.constant 0 : index
    %7 = vector.load %arg4[%c0_5, %c0_6] : memref<32x1xf32, #tpu.memory_space<vmem>>, vector<32x1xf32>
    %c0_7 = arith.constant 0 : index
    %c0_8 = arith.constant 0 : index
    %8 = vector.load %arg5[%c0_7, %c0_8] : memref<1x1xf32, #tpu.memory_space<vmem>>, vector<1x1xf32>
    %9 = vector.broadcast %7 : vector<32x1xf32> to vector<32x128xf32>
    %10 = arith.mulf %6, %9 : vector<32x128xf32>
    %cst_9 = arith.constant dense<0.000000e+00> : vector<128xf32>
    %11 = vector.multi_reduction <add>, %10, %cst_9 [0] : vector<32x128xf32> to vector<128xf32>
    %12 = vector.shape_cast %11 : vector<128xf32> to vector<1x128xf32>
    %13 = vector.broadcast %8 : vector<1x1xf32> to vector<1x128xf32>
    %14 = arith.addf %12, %13 : vector<1x128xf32>
    %c0_10 = arith.constant 0 : index
    %c0_11 = arith.constant 0 : index
    %15 = vector.load %arg6[%c0_10, %c0_11] : memref<1x128xf32, #tpu.memory_space<vmem>>, vector<1x128xf32>
    tpu.vector_store %arg6[%c0_10, %c0_11], %14 {strides = array<i32>} : memref<1x128xf32, #tpu.memory_space<vmem>>, vector<1x128xf32>,
    return
  }
  func.func @transform_0(%arg0: i32) -> (i32, i32) {
    %c0_i32 = arith.constant 0 : i32
    %c0_i32_0 = arith.constant 0 : i32
    return %arg0, %c0_i32 : i32, i32
  }
  func.func @transform_1(%arg0: i32) -> (i32, i32) {
    %c0_i32 = arith.constant 0 : i32
    %c0_i32_0 = arith.constant 0 : i32
    %c0_i32_1 = arith.constant 0 : i32
    return %c0_i32, %c0_i32_0 : i32, i32
  }
  func.func @transform_2(%arg0: i32) -> (i32, i32) {
    %c0_i32 = arith.constant 0 : i32
    %c0_i32_0 = arith.constant 0 : i32
    %c0_i32_1 = arith.constant 0 : i32
    return %c0_i32, %c0_i32_0 : i32, i32
  }
  func.func @transform_3(%arg0: i32) -> (i32, i32) {
    %c0_i32 = arith.constant 0 : i32
    %c0_i32_0 = arith.constant 0 : i32
    %c0_i32_1 = arith.constant 0 : i32
    return %c0_i32, %c0_i32_0 : i32, i32
  }
  func.func @transform_4(%arg0: i32) -> (i32, i32) {
    %c0_i32 = arith.constant 0 : i32
    %c0_i32_0 = arith.constant 0 : i32
    %c0_i32_1 = arith.constant 0 : i32
    return %c0_i32, %c0_i32_0 : i32, i32
  }
  func.func @transform_5(%arg0: i32) -> (i32, i32) {
    %c0_i32 = arith.constant 0 : i32
    %c0_i32_0 = arith.constant 0 : i32
    return %c0_i32, %arg0 : i32, i32
  }
}

</mosaic_0001>

<bundles_post_ra>
// kernel: tpu_custom_call.1
= control target key start
LH: loop header
LB: loop body
LE: loop exit
PB: predicated region body
PF: predicated region fallthrough
CT: control target
= control target key end

     0   :  { %s480_s0 = inlined_call_operand.vmem [shape: bf16[128,64], index: 0, kind: input, shape index: {}]   ;;  %s481_s1 = inlined_call_operand.vmem [shape: bf16[32,64], index: 1, kind: input, shape index: {}]   ;;  %s482_s2 = inlined_call_operand.vmem [shape: f32[32,1], index: 2, kind: input, shape index: {}]   ;;  %s483_s3 = inlined_call_operand.vmem [shape: f32[32,1], index: 3, kind: input, shape index: {}]   ;;  %s484_s4 = inlined_call_operand.<no memory space> [shape: f32[1,1], index: 4, kind: input, shape index: {}]   ;;  %s485_s5 = inlined_call_operand.hbm [shape: f32[1,128], index: 5, kind: output, shape index: {}]  }
   0x1   :  { %v10_v0 = vstv %s484_s4 }
   0x2   :  { %11 = vst [vmem:[#allocation2] sm:$0x1] %v10_v0 }
   0x3   :  { %v319_v1 = vld [vmem:[%s480_s0] sm:$0xff]   ;;  %vm118_vm0 = vcmask 523264   ;;  %v320_v2 = vld [vmem:[%s480_s0 + $0x8] sm:$0xff]   ;;  %v361_v4 = vmov 0   ;;  %v321_v5 = vld [vmem:[%s480_s0 + $0x10] sm:$0xff]  }
   0x4   :  { %307 = vmatprep.subr.msk.bf16.mxu0 %vm118_vm0, %v319_v1  ;;  %v126_v3 = vsel %vm118_vm0, %v319_v1, 0  ;;  %317 = vset.pattern.permute.xlu0 %v361_v4  ;;  %v129_v6 = vsel %vm118_vm0, %v320_v2, 0  ;;  %v327_v7 = vld [vmem:[%s481_s1] sm:$0xff]   ;;  %v30_v9 = vld [vmem:[%s482_s2 + $0x10] sm:$0xff]  ;;  %v29_v10 = vld [vmem:[%s482_s2 + $0x8] sm:$0xff] }
   0x5   :  { %288 = vmatpush3.bf16.xpose.msra.mxu0 %v126_v3  ;;  %318 = vset.pattern.permute.xlu1 %v361_v4  ;;  %v28_v8 = vld [vmem:[%s482_s2] sm:$0xff]  ;;  %v31_v11 = vld [vmem:[%s482_s2 + $0x18] sm:$0xff] }
   0x6   :  { %308 = vmatprep.subr.msk.bf16.mxu0 %vm118_vm0, %v320_v2  ;;  %303 = vmatprep.mubr.msk.bf16.mxu0 %vm118_vm0, %v327_v7 }
   0x7   :  { %50 = vperm.xlu0 %317, %v28_v8   ;;  %60 = vperm.xlu1 %318, %v30_v9  }
   0xd   :  { %290 = vmatpush3.bf16.xpose.msra.mxu0 %v129_v6 }
   0xe   :  { %309 = vmatprep.subr.msk.bf16.mxu0 %vm118_vm0, %v321_v5 }
   0xf   :  { %12 = vsyncpa [#allocation4], 0  ;;  %55 = vperm.xlu0 %317, %v29_v10   ;;  %v132_v12 = vsel %vm118_vm0, %v321_v5, 0  ;;  %v322_v13 = vld [vmem:[%s480_s0 + $0x18] sm:$0xff]   ;;  %v202_v14 = vld [vmem:[%s483_s3] sm:$0xff]  ;;  %65 = vperm.xlu1 %318, %v31_v11   ;;  %v245_v55 = vlaneseq }
  0x10   :  { %v203_v15 = vld [vmem:[%s483_s3 + $0x8] sm:$0xff]  ;;  %v204_v16 = vld [vmem:[%s483_s3 + $0x10] sm:$0xff]  ;;  %v205_v17 = vld [vmem:[%s483_s3 + $0x18] sm:$0xff]  ;;  %v135_v18 = vsel %vm118_vm0, %v322_v13, 0 }
  0x11   :  { %v323_v19 = vld [vmem:[%s480_s0 + $0x20] sm:$0xff]   ;;  %v324_v22 = vld [vmem:[%s480_s0 + $0x28] sm:$0xff]   ;;  %v325_v24 = vld [vmem:[%s480_s0 + $0x30] sm:$0xff]   ;;  %v246_v58 = vshrl.u32 %v245_v55, 7 }
  0x12   :  { %v206_v20 = vld [vmem:[#allocation2] sm:$0x1]  ;;  %v138_v21 = vsel %vm118_vm0, %v323_v19, 0  ;;  %v141_v23 = vsel %vm118_vm0, %v324_v22, 0  ;;  %v144_v25 = vsel %vm118_vm0, %v325_v24, 0  ;;  %v326_v26 = vld [vmem:[%s480_s0 + $0x38] sm:$0xff]  }
  0x13   :  { %209 = vperm.xlu0 %317, %v202_v14   ;;  %214 = vperm.xlu1 %318, %v203_v15   ;;  %v147_v27 = vsel %vm118_vm0, %v326_v26, 0  ;;  %v328_v28 = vld [vmem:[%s481_s1 + $0x8] sm:$0xff]   ;;  %v247_v61 = vsub.s32 0, %v246_v58  ;;  %s362_s0 = smov [#allocation3]  }
  0x14   :  { %s257_s1 = sshll.u32 %s362_s0, 4  ;;  %s258_s1 = int_to_ptr.vmem [resolvable:$true] %s257_s1 }
  0x15   :  { %292 = vmatpush3.bf16.xpose.msra.mxu0 %v132_v12  ;;  %s337_s27 = scalar_lea.vmem %s258_s1, 16  ;;  %s341_s28 = scalar_lea.vmem %s258_s1, 32 }
  0x16   :  { %310 = vmatprep.subr.msk.bf16.mxu0 %vm118_vm0, %v322_v13  ;;  %p338_p0 = scmp.ne.s32.totalorder %s258_s1, %s337_s27  ;;  %p342_p1 = scmp.lt.s32.totalorder %s258_s1, %s258_s1 }
  0x17   :  { %219 = vperm.xlu0 %317, %v204_v16   ;;  %224 = vperm.xlu1 %318, %v205_v17   ;;  %p343_p2 = scmp.lt.s32.totalorder %s341_s28, %s337_s27 }
  0x19   :  { %p344_p3 = por %p343_p2, %p342_p1 }
  0x1b   :  { %242 = vperm.xlu0 %317, %v206_v20   ;;  %p345_p4 = pnand %p344_p3, %p338_p0 }
  0x1d   :  { %294 = vmatpush3.bf16.xpose.msra.mxu0 %v135_v18 }
  0x1e   :  { %311 = vmatprep.subr.msk.bf16.mxu0 %vm118_vm0, %v323_v19 }
  0x25   :  { %296 = vmatpush3.bf16.xpose.msra.mxu0 %v138_v21 }
  0x26   :  { %312 = vmatprep.subr.msk.bf16.mxu0 %vm118_vm0, %v324_v22 }
  0x2d   :  { %298 = vmatpush3.bf16.xpose.msra.mxu0 %v141_v23 }
  0x2e   :  { %313 = vmatprep.subr.msk.bf16.mxu0 %vm118_vm0, %v325_v24 }
  0x35   :  { %300 = vmatpush3.bf16.xpose.msra.mxu0 %v144_v25 }
  0x36   :  { %314 = vmatprep.subr.msk.bf16.mxu0 %vm118_vm0, %v326_v26 }
  0x3d   :  { %302 = vmatpush3.bf16.xpose.msra.mxu0 %v147_v27 }
  0x44   :  { %304 = vmatmul.mubr.msk.bf16.vlgmr.msra.gmra.mrb[0].mxu0 %vm118_vm0, %v328_v28 }
  0x86   :  { %v51_v29 = vpop.permute.xlu0 %50  ;;  %v61_v30 = vpop.permute.xlu1 %60 }
  0x8e   :  { %v56_v34 = vpop.permute.xlu0 %55  ;;  %v66_v37 = vpop.permute.xlu1 %65 }
  0x92   :  { %v210_v41 = vpop.permute.xlu0 %209  ;;  %v215_v43 = vpop.permute.xlu1 %214 }
  0x96   :  { %v220_v49 = vpop.permute.xlu0 %219  ;;  %v225_v52 = vpop.permute.xlu1 %224 }
  0x9a   :  { %v243_v63 = vpop.permute.xlu0 %242 }
  0x9b   :  { %v248_v1 = vrot.slane %v243_v63, %v247_v61 }
 0x117   :  { %v305_v31 = vpop.f32.mrb[0].mxu0 }
 0x118   :  { %v192_v32 = vadd.f32 %v305_v31, %v61_v30  ;;  %v183_v33 = vpop.f32.mrb[1].mxu0 }
 0x119   :  { %v184_v35 = vadd.f32 %v183_v33, %v51_v29  ;;  %v306_v36 = vpop.f32.mrb[2].mxu0 }
 0x11a   :  { %v186_v38 = vpop.f32.mrb[3].mxu0  ;;  %v195_v39 = vadd.f32 %v306_v36, %v66_v37 }
 0x11b   :  { %329 = vtanh.f32 %v184_v35  ;;  %v187_v40 = vadd.f32 %v186_v38, %v56_v34 }
 0x11c   :  { %331 = vtanh.f32 %v192_v32 }
 0x11d   :  { %333 = vtanh.f32 %v187_v40 }
 0x11e   :  { %335 = vtanh.f32 %v195_v39 }
 0x125   :  { %v330_v42 = vpop.eup %329 }
 0x126   :  { %v332_v44 = vpop.eup %331  ;;  %v227_v46 = vmul.f32 %v330_v42, %v210_v41 }
 0x127   :  { %v334_v45 = vpop.eup %333  ;;  %v229_v50 = vmul.f32 %v332_v44, %v220_v49 }
 0x128   :  { %v228_v47 = vmul.f32 %v334_v45, %v215_v43  ;;  %v336_v48 = vpop.eup %335 }
 0x129   :  { %v230_v53 = vmul.f32 %v336_v48, %v225_v52 }
 0x12a   :  { %v231_v51 = vadd.f32 %v228_v47, %v227_v46 }
 0x12c   :  { %v232_v54 = vadd.f32 %v231_v51, %v229_v50 }
 0x12e   :  { %v233_v56 = vadd.f32 %v232_v54, %v230_v53 }
 0x130   :  { %v234_v57 = vrot.slane %v233_v56, 4 }
 0x132   :  { %v235_v59 = vadd.f32 %v234_v57, %v233_v56 }
 0x134   :  { %v236_v60 = vrot.slane %v235_v59, 2 }
 0x136   :  { %v237_v62 = vadd.f32 %v236_v60, %v235_v59 }
 0x138   :  { %v238_v0 = vrot.slane %v237_v62, 1 }
 0x13a   :  { %v239_v2 = vadd.f32 %v238_v0, %v237_v62 }
 0x13c   :  { %v249_v3 = vadd.f32 %v248_v1, %v239_v2 }
 0x13e   :  { %250 = vst [vmem:[#allocation3] sm:$0x1] %v249_v3 }
 0x13f   :  { %348 = shalt.err (!%p345_p4)
}
 0x140   :  { %s349_s6 = scalar_lea.hbm %s485_s5, 16 }
 0x141   :  { %p350_p5 = scmp.ne.s32.totalorder %s485_s5, %s349_s6  ;;  %p353_p6 = scmp.lt.u32.totalorder %s349_s6, %s485_s5 }
 0x143   :  { %p355_p7 = pnand %p353_p6, %p350_p5 }
 0x145   :  { %358 = shalt.err (!%p355_p7)
}
 0x146   :  { %260 = dma.vmem_to_hbm [thread:$0]  %s258_s1, 16, %s485_s5, [#allocation4]  }
 0x147   :  { %359 = dma.done.wait [#allocation4], 16  }
 0x148   :  { %360 = vsyncadd [#allocation4], 4294967280 }
 0x149   :  { %264 = vsyncpa [#allocation4], 1 }

// kernel: tpu_custom_call.1
= control target key start
LH: loop header
LB: loop body
LE: loop exit
PB: predicated region body
PF: predicated region fallthrough
CT: control target
= control target key end

     0   :  { %s480_s0 = inlined_call_operand.vmem [shape: bf16[128,64], index: 0, kind: input, shape index: {}]   ;;  %s481_s1 = inlined_call_operand.vmem [shape: bf16[32,64], index: 1, kind: input, shape index: {}]   ;;  %s482_s2 = inlined_call_operand.vmem [shape: f32[32,1], index: 2, kind: input, shape index: {}]   ;;  %s483_s3 = inlined_call_operand.vmem [shape: f32[32,1], index: 3, kind: input, shape index: {}]   ;;  %s484_s4 = inlined_call_operand.<no memory space> [shape: f32[1,1], index: 4, kind: input, shape index: {}]   ;;  %s485_s5 = inlined_call_operand.hbm [shape: f32[1,128], index: 5, kind: output, shape index: {}]  }
   0x1   :  { %v10_v0 = vstv %s484_s4 }
   0x2   :  { %11 = vst [vmem:[#allocation2] sm:$0x1] %v10_v0 }
   0x3   :  { %v319_v1 = vld [vmem:[%s480_s0] sm:$0xff]   ;;  %vm118_vm0 = vcmask 523264   ;;  %v320_v2 = vld [vmem:[%s480_s0 + $0x8] sm:$0xff]   ;;  %v361_v4 = vmov 0   ;;  %v321_v5 = vld [vmem:[%s480_s0 + $0x10] sm:$0xff]  }
   0x4   :  { %307 = vmatprep.subr.msk.bf16.mxu0 %vm118_vm0, %v319_v1  ;;  %v126_v3 = vsel %vm118_vm0, %v319_v1, 0  ;;  %317 = vset.pattern.permute.xlu0 %v361_v4  ;;  %v129_v6 = vsel %vm118_vm0, %v320_v2, 0  ;;  %v327_v7 = vld [vmem:[%s481_s1] sm:$0xff]   ;;  %v30_v9 = vld [vmem:[%s482_s2 + $0x10] sm:$0xff]  ;;  %v29_v10 = vld [vmem:[%s482_s2 + $0x8] sm:$0xff] }
   0x5   :  { %288 = vmatpush3.bf16.xpose.msra.mxu0 %v126_v3  ;;  %318 = vset.pattern.permute.xlu1 %v361_v4  ;;  %v28_v8 = vld [vmem:[%s482_s2] sm:$0xff]  ;;  %v31_v11 = vld [vmem:[%s482_s2 + $0x18] sm:$0xff] }
   0x6   :  { %308 = vmatprep.subr.msk.bf16.mxu0 %vm118_vm0, %v320_v2  ;;  %303 = vmatprep.mubr.msk.bf16.mxu0 %vm118_vm0, %v327_v7 }
   0x7   :  { %50 = vperm.xlu0 %317, %v28_v8   ;;  %60 = vperm.xlu1 %318, %v30_v9  }
   0xd   :  { %290 = vmatpush3.bf16.xpose.msra.mxu0 %v129_v6 }
   0xe   :  { %309 = vmatprep.subr.msk.bf16.mxu0 %vm118_vm0, %v321_v5 }
   0xf   :  { %12 = vsyncpa [#allocation4], 0  ;;  %55 = vperm.xlu0 %317, %v29_v10   ;;  %v132_v12 = vsel %vm118_vm0, %v321_v5, 0  ;;  %v322_v13 = vld [vmem:[%s480_s0 + $0x18] sm:$0xff]   ;;  %v202_v14 = vld [vmem:[%s483_s3] sm:$0xff]  ;;  %65 = vperm.xlu1 %318, %v31_v11   ;;  %v245_v55 = vlaneseq }
  0x10   :  { %v203_v15 = vld [vmem:[%s483_s3 + $0x8] sm:$0xff]  ;;  %v204_v16 = vld [vmem:[%s483_s3 + $0x10] sm:$0xff]  ;;  %v205_v17 = vld [vmem:[%s483_s3 + $0x18] sm:$0xff]  ;;  %v135_v18 = vsel %vm118_vm0, %v322_v13, 0 }
  0x11   :  { %v323_v19 = vld [vmem:[%s480_s0 + $0x20] sm:$0xff]   ;;  %v324_v22 = vld [vmem:[%s480_s0 + $0x28] sm:$0xff]   ;;  %v325_v24 = vld [vmem:[%s480_s0 + $0x30] sm:$0xff]   ;;  %v246_v58 = vshrl.u32 %v245_v55, 7 }
  0x12   :  { %v206_v20 = vld [vmem:[#allocation2] sm:$0x1]  ;;  %v138_v21 = vsel %vm118_vm0, %v323_v19, 0  ;;  %v141_v23 = vsel %vm118_vm0, %v324_v22, 0  ;;  %v144_v25 = vsel %vm118_vm0, %v325_v24, 0  ;;  %v326_v26 = vld [vmem:[%s480_s0 + $0x38] sm:$0xff]  }
  0x13   :  { %209 = vperm.xlu0 %317, %v202_v14   ;;  %214 = vperm.xlu1 %318, %v203_v15   ;;  %v147_v27 = vsel %vm118_vm0, %v326_v26, 0  ;;  %v328_v28 = vld [vmem:[%s481_s1 + $0x8] sm:$0xff]   ;;  %v247_v61 = vsub.s32 0, %v246_v58  ;;  %s362_s0 = smov [#allocation3]  }
  0x14   :  { %s257_s1 = sshll.u32 %s362_s0, 4  ;;  %s258_s1 = int_to_ptr.vmem [resolvable:$true] %s257_s1 }
  0x15   :  { %292 = vmatpush3.bf16.xpose.msra.mxu0 %v132_v12  ;;  %s337_s27 = scalar_lea.vmem %s258_s1, 16  ;;  %s341_s28 = scalar_lea.vmem %s258_s1, 32 }
  0x16   :  { %310 = vmatprep.subr.msk.bf16.mxu0 %vm118_vm0, %v322_v13  ;;  %p338_p0 = scmp.ne.s32.totalorder %s258_s1, %s337_s27  ;;  %p342_p1 = scmp.lt.s32.totalorder %s258_s1, %s258_s1 }
  0x17   :  { %219 = vperm.xlu0 %317, %v204_v16   ;;  %224 = vperm.xlu1 %318, %v205_v17   ;;  %p343_p2 = scmp.lt.s32.totalorder %s341_s28, %s337_s27 }
  0x19   :  { %p344_p3 = por %p343_p2, %p342_p1 }
  0x1b   :  { %242 = vperm.xlu0 %317, %v206_v20   ;;  %p345_p4 = pnand %p344_p3, %p338_p0 }
  0x1d   :  { %294 = vmatpush3.bf16.xpose.msra.mxu0 %v135_v18 }
  0x1e   :  { %311 = vmatprep.subr.msk.bf16.mxu0 %vm118_vm0, %v323_v19 }
  0x25   :  { %296 = vmatpush3.bf16.xpose.msra.mxu0 %v138_v21 }
  0x26   :  { %312 = vmatprep.subr.msk.bf16.mxu0 %vm118_vm0, %v324_v22 }
  0x2d   :  { %298 = vmatpush3.bf16.xpose.msra.mxu0 %v141_v23 }
  0x2e   :  { %313 = vmatprep.subr.msk.bf16.mxu0 %vm118_vm0, %v325_v24 }
  0x35   :  { %300 = vmatpush3.bf16.xpose.msra.mxu0 %v144_v25 }
  0x36   :  { %314 = vmatprep.subr.msk.bf16.mxu0 %vm118_vm0, %v326_v26 }
  0x3d   :  { %302 = vmatpush3.bf16.xpose.msra.mxu0 %v147_v27 }
  0x44   :  { %304 = vmatmul.mubr.msk.bf16.vlgmr.msra.gmra.mrb[0].mxu0 %vm118_vm0, %v328_v28 }
  0x86   :  { %v51_v29 = vpop.permute.xlu0 %50  ;;  %v61_v30 = vpop.permute.xlu1 %60 }
  0x8e   :  { %v56_v34 = vpop.permute.xlu0 %55  ;;  %v66_v37 = vpop.permute.xlu1 %65 }
  0x92   :  { %v210_v41 = vpop.permute.xlu0 %209  ;;  %v215_v43 = vpop.permute.xlu1 %214 }
  0x96   :  { %v220_v49 = vpop.permute.xlu0 %219  ;;  %v225_v52 = vpop.permute.xlu1 %224 }
  0x9a   :  { %v243_v63 = vpop.permute.xlu0 %242 }
  0x9b   :  { %v248_v1 = vrot.slane %v243_v63, %v247_v61 }
 0x117   :  { %v305_v31 = vpop.f32.mrb[0].mxu0 }
 0x118   :  { %v192_v32 = vadd.f32 %v305_v31, %v61_v30  ;;  %v183_v33 = vpop.f32.mrb[1].mxu0 }
 0x119   :  { %v184_v35 = vadd.f32 %v183_v33, %v51_v29  ;;  %v306_v36 = vpop.f32.mrb[2].mxu0 }
 0x11a   :  { %v186_v38 = vpop.f32.mrb[3].mxu0  ;;  %v195_v39 = vadd.f32 %v306_v36, %v66_v37 }
 0x11b   :  { %329 = vtanh.f32 %v184_v35  ;;  %v187_v40 = vadd.f32 %v186_v38, %v56_v34 }
 0x11c   :  { %331 = vtanh.f32 %v192_v32 }
 0x11d   :  { %333 = vtanh.f32 %v187_v40 }
 0x11e   :  { %335 = vtanh.f32 %v195_v39 }
 0x125   :  { %v330_v42 = vpop.eup %329 }
 0x126   :  { %v332_v44 = vpop.eup %331  ;;  %v227_v46 = vmul.f32 %v330_v42, %v210_v41 }
 0x127   :  { %v334_v45 = vpop.eup %333  ;;  %v229_v50 = vmul.f32 %v332_v44, %v220_v49 }
 0x128   :  { %v228_v47 = vmul.f32 %v334_v45, %v215_v43  ;;  %v336_v48 = vpop.eup %335 }
 0x129   :  { %v230_v53 = vmul.f32 %v336_v48, %v225_v52 }
 0x12a   :  { %v231_v51 = vadd.f32 %v228_v47, %v227_v46 }
 0x12c   :  { %v232_v54 = vadd.f32 %v231_v51, %v229_v50 }
 0x12e   :  { %v233_v56 = vadd.f32 %v232_v54, %v230_v53 }
 0x130   :  { %v234_v57 = vrot.slane %v233_v56, 4 }
 0x132   :  { %v235_v59 = vadd.f32 %v234_v57, %v233_v56 }
 0x134   :  { %v236_v60 = vrot.slane %v235_v59, 2 }
 0x136   :  { %v237_v62 = vadd.f32 %v236_v60, %v235_v59 }
 0x138   :  { %v238_v0 = vrot.slane %v237_v62, 1 }
 0x13a   :  { %v239_v2 = vadd.f32 %v238_v0, %v237_v62 }
 0x13c   :  { %v249_v3 = vadd.f32 %v248_v1, %v239_v2 }
 0x13e   :  { %250 = vst [vmem:[#allocation3] sm:$0x1] %v249_v3 }
 0x13f   :  { %348 = shalt.err (!%p345_p4)
}
 0x140   :  { %s349_s6 = scalar_lea.hbm %s485_s5, 16 }
 0x141   :  { %p350_p5 = scmp.ne.s32.totalorder %s485_s5, %s349_s6  ;;  %p353_p6 = scmp.lt.u32.totalorder %s349_s6, %s485_s5 }
 0x143   :  { %p355_p7 = pnand %p353_p6, %p350_p5 }
 0x145   :  { %358 = shalt.err (!%p355_p7)
}
 0x146   :  { %260 = dma.vmem_to_hbm [thread:$0]  %s258_s1, 16, %s485_s5, [#allocation4]  }
 0x147   :  { %359 = dma.done.wait [#allocation4], 16  }
 0x148   :  { %360 = vsyncadd [#allocation4], 4294967280 }
 0x149   :  { %264 = vsyncpa [#allocation4], 1 }

</bundles_post_ra>
